<compile_context>
chip_gen: v6e
topology: v6e:2x2x1
jax: 0.10.0
libtpu: 0.0.40
codegen_flags: <defaults>
</compile_context>

<pallas_src>
import jax
import jax.numpy as jnp
from jax.experimental import pallas as pl
from jax.experimental.pallas import tpu as pltpu

C_CONST = 8.0   # self.c in the PyTorch module
LANE = 128      # TPU lane width


def _rglru_kernel(x_ref, w_ref, bias_ref, neg_decay_ref, o_ref, h_ref):
    # x_ref:         (T_BLK, Cp)  f32, current time-block of one batch element
    # w_ref:         (Cp, 2Cp)    bf16 fused [Wa^T | Wx^T] (zero-padded)
    # bias_ref:      (1, 2Cp)     f32 fused [ba | bx]
    # neg_decay_ref: (1, Cp)      f32 -(c * softplus(Lambda)), precomputed in wrapper
    # o_ref:         (T_BLK, Cp)
    # h_ref:         (1, Cp) f32 scratch — recurrent state, persists across time blocks
    t_blk, Cp = x_ref.shape

    # New batch element starts at time-block 0: reset the recurrent state.
    @pl.when(pl.program_id(1) == 0)
    def _():
        h_ref[...] = jnp.zeros_like(h_ref)

    # ---------- parallel gate phase (no dependence on h) ----------
    x = x_ref[...]                                                    # f32 (T_BLK, Cp)
    gates = jax.nn.sigmoid(
        jnp.dot(x.astype(jnp.bfloat16), w_ref[...],                   # bf16 MXU, f32 acc
                preferred_element_type=jnp.float32)
        + bias_ref[...])                                              # (T_BLK, 2Cp) f32
    rt = gates[:, :Cp]                                                # recurrence gate
    it = gates[:, Cp:]                                                # input gate

    log_a = neg_decay_ref[...] * rt                                   # (T_BLK, Cp)
    a = jnp.exp(log_a)
    # Same formula as the reference module; a <= 1 so max() only guards rounding.
    b = jnp.sqrt(jnp.maximum(1.0 - a * a, 0.0)) * (it * x)

    # ---------- log-depth recurrence: Hillis-Steele scan over the time (sublane) axis
    # Compose affine maps h -> a*h + b.  After the scan:
    #   A[t] = prod_{s<=t} a_s,   B[t] = sum_s (prod_{s<u<=t} a_u) * b_s
    # so out[t] = A[t] * h_prev + B[t].
    row = jax.lax.broadcasted_iota(jnp.int32, (t_blk, Cp), 0)
    A, B = a, b
    d = 1
    while d < t_blk:
        # rolled[t] = X[t - d] (wrapped rows t < d are replaced by the identity map).
        a_sh = jnp.where(row >= d, pltpu.roll(A, shift=d, axis=0), 1.0)
        b_sh = jnp.where(row >= d, pltpu.roll(B, shift=d, axis=0), 0.0)
        B = A * b_sh + B          # (later ∘ earlier): b = a2*b1 + b2
        A = A * a_sh              #                    a = a2*a1
        d *= 2

    out = A * h_ref[...] + B                                          # (T_BLK, Cp)
    o_ref[...] = out.astype(o_ref.dtype)                              # dense, lane-dense
    h_ref[...] = out[t_blk - 1:t_blk, :]                              # carry to next block


def rg_lru_forward(x, Wa, Wx, ba, bx, Lambda, *, t_blk=512):
    """x: (B, T, C) float32. Returns (B, T, C) of hidden states (h_0 = 0)."""
    B, T, C = x.shape
    Cp = ((C + LANE - 1) // LANE) * LANE                 # pad channels to lane multiple

    # Fused gate projection y = x @ [Wa^T | Wx^T] + [ba | bx], zero-padded to Cp.
    # Weights in bf16 (MXU-native, halves weight VMEM); biases/decay stay f32.
    w = jnp.zeros((Cp, 2 * Cp), jnp.float32)
    w = w.at[:C, :C].set(Wa.T).at[:C, Cp:Cp + C].set(Wx.T)
    w = w.astype(jnp.bfloat16)
    bias = jnp.zeros((1, 2 * Cp), jnp.float32)
    bias = bias.at[:, :C].set(jnp.reshape(ba, (1, C))).at[:, Cp:Cp + C].set(
        jnp.reshape(bx, (1, C)))
    neg_decay = jnp.zeros((1, Cp), jnp.float32)
    neg_decay = neg_decay.at[:, :C].set(
        -(C_CONST * jax.nn.softplus(jnp.reshape(Lambda, (1, C)))))

    # Time blocking: t_blk timesteps per grid step (multiple of 8 sublanes).
    t_blk = max(8, min(int(t_blk), T))
    t_blk = ((t_blk + 7) // 8) * 8
    T_pad = ((T + t_blk - 1) // t_blk) * t_blk
    n_tb = T_pad // t_blk

    # Zero padding sits at the end of each batch's time axis and in the extra channel
    # lanes; h resets at time-block 0 per batch, and padded channels stay exactly 0.
    if T_pad != T or Cp != C:
        x_p = jnp.zeros((B, T_pad, Cp), x.dtype).at[:, :T, :C].set(x)
    else:
        x_p = x

    out = pl.pallas_call(
        _rglru_kernel,
        out_shape=jax.ShapeDtypeStruct((B, T_pad, Cp), x.dtype),
        grid_spec=pltpu.PrefetchScalarGridSpec(
            num_scalar_prefetch=0,
            grid=(B, n_tb),
            in_specs=[
                pl.BlockSpec((None, t_blk, Cp), lambda b, t: (b, t, 0)),   # x slab
                pl.BlockSpec((Cp, 2 * Cp), lambda b, t: (0, 0)),           # [Wa^T|Wx^T]
                pl.BlockSpec((1, 2 * Cp), lambda b, t: (0, 0)),            # [ba|bx]
                pl.BlockSpec((1, Cp), lambda b, t: (0, 0)),                # -c*softplus(L)
            ],
            out_specs=pl.BlockSpec((None, t_blk, Cp), lambda b, t: (b, t, 0)),
            scratch_shapes=[
                pltpu.VMEM((1, Cp), jnp.float32),    # recurrent state h (block carry)
            ],
        ),
        compiler_params=pltpu.CompilerParams(
            # batch is independent -> parallel; time is a sequential scan -> arbitrary
            dimension_semantics=("parallel", "arbitrary"),
            vmem_limit_bytes=64 * 1024 * 1024,
        ),
    )(x_p, w, bias, neg_decay)

    return out[:, :T, :C]


def _reference(x, Wa, Wx, ba, bx, Lambda, gate_dtype=jnp.float32):
    """Pure-JAX reference matching the PyTorch loop.

    gate_dtype=bfloat16 rounds the gate-matmul operands exactly like the kernel's
    MXU path (f32 accumulation), for a tight check of the scan logic.
    """
    B, T, C = x.shape
    neg_decay = -(C_CONST * jax.nn.softplus(jnp.reshape(Lambda, (1, C))))
    WaT = Wa.T.astype(gate_dtype).astype(jnp.float32)
    WxT = Wx.T.astype(gate_dtype).astype(jnp.float32)
    ba2 = jnp.reshape(ba, (1, C))
    bx2 = jnp.reshape(bx, (1, C))

    def step(h, xt):
        xg = xt.astype(gate_dtype).astype(jnp.float32)
        rt = jax.nn.sigmoid(xg @ WaT + ba2)
        it = jax.nn.sigmoid(xg @ WxT + bx2)
        at = jnp.exp(neg_decay * rt)
        h_new = at * h + jnp.sqrt(1.0 - at ** 2) * (it * xt)
        return h_new, h_new

    h0 = jnp.zeros((B, C), dtype=x.dtype)
    _, ys = jax.lax.scan(step, h0, jnp.transpose(x, (1, 0, 2)))
    return jnp.transpose(ys, (1, 0, 2))


if __name__ == "__main__":
    B, T, C = 2, 128, 32  # rnn_width = 32

    key = jax.random.PRNGKey(0)
    k_x, k_wa, k_wx, k_lam = jax.random.split(key, 4)

    # Deterministic parameter init mirroring Cell.reset_parameter():
    #   kaiming_normal_ (fan_in, gain(sigmoid)=1) => std = 1/sqrt(C)
    std = 1.0 / jnp.sqrt(jnp.float32(C))
    Wa = jax.random.normal(k_wa, (C, C), dtype=jnp.float32) * std
    Wx = jax.random.normal(k_wx, (C, C), dtype=jnp.float32) * std
    ba = jnp.zeros((1, C), dtype=jnp.float32)
    bx = jnp.zeros((1, C), dtype=jnp.float32)

    def logit(p):
        return jnp.log(p / (1.0 - p))

    lo = logit(jnp.float32(0.9 ** (1.0 / C_CONST)))
    hi = logit(jnp.float32(0.999 ** (1.0 / C_CONST)))
    Lambda = jax.random.uniform(k_lam, (1, C), dtype=jnp.float32,
                                minval=lo, maxval=hi)

    x = jax.random.normal(k_x, (B, T, C), dtype=jnp.float32)

    # Two Lambdas: the module's own init (fast-decay regime) and a "memory-heavy"
    # one (a_t ~ 0.5-0.75) that genuinely exercises the doubling scan and the
    # cross-block h carry (t_blk=64 -> 2 time blocks per batch element).
    lambda_mem = jnp.full((1, C), -2.0, dtype=jnp.float32)
    for lam in (Lambda, lambda_mem):
        out = rg_lru_forward(x, Wa, Wx, ba, bx, lam, t_blk=64)
        out = jax.block_until_ready(out)
        assert out.shape == (B, T, C)

        # Tight check vs a reference that rounds gate-matmul operands to bf16 exactly
        # like the kernel's MXU path (only summation order / scan reassociation differ).
        ref_bf16 = _reference(x, Wa, Wx, ba, bx, lam, gate_dtype=jnp.bfloat16)
        assert jnp.allclose(out, ref_bf16, rtol=2e-3, atol=2e-3), \
            "mismatch vs bf16-gate reference"

        # Loose check vs the full-f32 reference (tolerance reflects the intentional
        # bf16 MXU operands recommended by the perf review).
        ref_f32 = _reference(x, Wa, Wx, ba, bx, lam, gate_dtype=jnp.float32)
        assert jnp.allclose(out, ref_f32, rtol=5e-2, atol=5e-2), \
            "mismatch vs f32 reference"

    print("KERNEL_OK")
</pallas_src>

<mosaic_0001>
module attributes {stable_mosaic.version = 11 : i64} {
  func.func @_rglru_kernel(%arg0: i32, %arg1: i32, %arg2: memref<1x64x128xf32, #tpu.memory_space<vmem>>, %arg3: memref<128x256xbf16, #tpu.memory_space<vmem>>, %arg4: memref<1x256xf32, #tpu.memory_space<vmem>>, %arg5: memref<1x128xf32, #tpu.memory_space<vmem>>, %arg6: memref<1x64x128xf32, #tpu.memory_space<vmem>>, %arg7: memref<1x128xf32, #tpu.memory_space<vmem>>) attributes {dimension_semantics = [#tpu.dimension_semantics<parallel>, #tpu.dimension_semantics<arbitrary>], iteration_bounds = array<i64: 2, 2>, scalar_prefetch = 0 : i64, scratch_operands = 1 : i64, tpu.core_type = #tpu.core_type<tc>, window_params = [{transform_indices = @transform_0, window_bounds = array<i64: 1, 64, 128>}, {pipeline_mode = #tpu.pipeline_mode<synchronous>, transform_indices = @transform_1, window_bounds = array<i64: 128, 256>}, {pipeline_mode = #tpu.pipeline_mode<synchronous>, transform_indices = @transform_2, window_bounds = array<i64: 1, 256>}, {pipeline_mode = #tpu.pipeline_mode<synchronous>, transform_indices = @transform_3, window_bounds = array<i64: 1, 128>}, {transform_indices = @transform_4, window_bounds = array<i64: 1, 64, 128>}]} {
    %c0_i32 = arith.constant 0 : i32
    %0 = arith.cmpi eq, %arg1, %c0_i32 : i32
    %1 = arith.extui %0 : i1 to i32
    %c0_i32_0 = arith.constant 0 : i32
    %2 = arith.cmpi ne, %1, %c0_i32_0 : i32
    scf.if %2 {
      %cst_49 = arith.constant 0.000000e+00 : f32
      %118 = vector.broadcast %cst_49 : f32 to vector<1x128xf32>
      %c0_50 = arith.constant 0 : index
      %c0_51 = arith.constant 0 : index
      %119 = vector.load %arg7[%c0_50, %c0_51] : memref<1x128xf32, #tpu.memory_space<vmem>>, vector<1x128xf32>
      tpu.vector_store %arg7[%c0_50, %c0_51], %118 {strides = array<i32>} : memref<1x128xf32, #tpu.memory_space<vmem>>, vector<1x128xf32>,
    } else {
    }
    %c0 = arith.constant 0 : index
    %c0_1 = arith.constant 0 : index
    %c0_2 = arith.constant 0 : index
    %3 = vector.load %arg2[%c0, %c0_1, %c0_2] : memref<1x64x128xf32, #tpu.memory_space<vmem>>, vector<1x64x128xf32>
    %4 = vector.shape_cast %3 : vector<1x64x128xf32> to vector<64x128xf32>
    %5 = arith.truncf %4 : vector<64x128xf32> to vector<64x128xbf16>
    %c0_3 = arith.constant 0 : index
    %c0_4 = arith.constant 0 : index
    %6 = vector.load %arg3[%c0_3, %c0_4] : memref<128x256xbf16, #tpu.memory_space<vmem>>, vector<128x256xbf16>
    %cst = arith.constant dense<0.000000e+00> : vector<64x256xf32>
    %7 = tpu.matmul %5, %6, %cst {dimension_numbers = #tpu.dot_dimension_numbers<[1], [0], [0], [1], [0, 0, 1, 1], [], []>} : vector<64x128xbf16>, vector<128x256xbf16>, vector<64x256xf32> -> vector<64x256xf32>
    %c0_5 = arith.constant 0 : index
    %c0_6 = arith.constant 0 : index
    %8 = vector.load %arg4[%c0_5, %c0_6] : memref<1x256xf32, #tpu.memory_space<vmem>>, vector<1x256xf32>
    %9 = vector.broadcast %8 : vector<1x256xf32> to vector<64x256xf32>
    %10 = arith.addf %7, %9 : vector<64x256xf32>
    %11 = arith.negf %10 : vector<64x256xf32>
    %12 = math.exp %11 : vector<64x256xf32>
    %cst_7 = arith.constant 1.000000e+00 : f32
    %13 = vector.broadcast %cst_7 : f32 to vector<64x256xf32>
    %14 = arith.addf %13, %12 : vector<64x256xf32>
    %15 = arith.divf %13, %14 : vector<64x256xf32>
    %16 = vector.extract_strided_slice %15 {offsets = [0, 0], sizes = [64, 128], strides = [1, 1]} : vector<64x256xf32> to vector<64x128xf32>
    %17 = vector.extract_strided_slice %15 {offsets = [0, 128], sizes = [64, 128], strides = [1, 1]} : vector<64x256xf32> to vector<64x128xf32>
    %c0_8 = arith.constant 0 : index
    %c0_9 = arith.constant 0 : index
    %18 = vector.load %arg5[%c0_8, %c0_9] : memref<1x128xf32, #tpu.memory_space<vmem>>, vector<1x128xf32>
    %19 = vector.broadcast %18 : vector<1x128xf32> to vector<64x128xf32>
    %20 = arith.mulf %19, %16 : vector<64x128xf32>
    %21 = math.exp %20 : vector<64x128xf32>
    %22 = arith.mulf %21, %21 : vector<64x128xf32>
    %cst_10 = arith.constant 1.000000e+00 : f32
    %23 = vector.broadcast %cst_10 : f32 to vector<64x128xf32>
    %24 = arith.subf %23, %22 : vector<64x128xf32>
    %cst_11 = arith.constant 0.000000e+00 : f32
    %25 = vector.broadcast %cst_11 : f32 to vector<64x128xf32>
    %26 = arith.maximumf %24, %25 : vector<64x128xf32>
    %27 = math.sqrt %26 : vector<64x128xf32>
    %28 = arith.mulf %17, %4 : vector<64x128xf32>
    %29 = arith.mulf %27, %28 : vector<64x128xf32>
    %30 = tpu.iota {dimensions = array<i32: 0>} : vector<64x128xi32>
    %c1_i32 = arith.constant 1 : i32
    %31 = vector.broadcast %c1_i32 : i32 to vector<64x128xi32>
    %32 = arith.cmpi sge, %30, %31 : vector<64x128xi32>
    %c1_i32_12 = arith.constant 1 : i32
    %33 = tpu.dynamic_rotate %21 by %c1_i32_12 dim 0 : vector<64x128xf32>, i32 -> vector<64x128xf32>
    %cst_13 = arith.constant 1.000000e+00 : f32
    %34 = vector.broadcast %cst_13 : f32 to vector<64x128xf32>
    %35 = arith.select %32, %33, %34 : vector<64x128xi1>, vector<64x128xf32>
    %c1_i32_14 = arith.constant 1 : i32
    %36 = vector.broadcast %c1_i32_14 : i32 to vector<64x128xi32>
    %37 = arith.cmpi sge, %30, %36 : vector<64x128xi32>
    %c1_i32_15 = arith.constant 1 : i32
    %38 = tpu.dynamic_rotate %29 by %c1_i32_15 dim 0 : vector<64x128xf32>, i32 -> vector<64x128xf32>
    %cst_16 = arith.constant 0.000000e+00 : f32
    %39 = vector.broadcast %cst_16 : f32 to vector<64x128xf32>
    %40 = arith.select %37, %38, %39 : vector<64x128xi1>, vector<64x128xf32>
    %41 = arith.mulf %21, %40 : vector<64x128xf32>
    %42 = arith.addf %41, %29 : vector<64x128xf32>
    %43 = arith.mulf %21, %35 : vector<64x128xf32>
    %c2_i32 = arith.constant 2 : i32
    %44 = vector.broadcast %c2_i32 : i32 to vector<64x128xi32>
    %45 = arith.cmpi sge, %30, %44 : vector<64x128xi32>
    %c2_i32_17 = arith.constant 2 : i32
    %46 = tpu.dynamic_rotate %43 by %c2_i32_17 dim 0 : vector<64x128xf32>, i32 -> vector<64x128xf32>
    %cst_18 = arith.constant 1.000000e+00 : f32
    %47 = vector.broadcast %cst_18 : f32 to vector<64x128xf32>
    %48 = arith.select %45, %46, %47 : vector<64x128xi1>, vector<64x128xf32>
    %c2_i32_19 = arith.constant 2 : i32
    %49 = vector.broadcast %c2_i32_19 : i32 to vector<64x128xi32>
    %50 = arith.cmpi sge, %30, %49 : vector<64x128xi32>
    %c2_i32_20 = arith.constant 2 : i32
    %51 = tpu.dynamic_rotate %42 by %c2_i32_20 dim 0 : vector<64x128xf32>, i32 -> vector<64x128xf32>
    %cst_21 = arith.constant 0.000000e+00 : f32
    %52 = vector.broadcast %cst_21 : f32 to vector<64x128xf32>
    %53 = arith.select %50, %51, %52 : vector<64x128xi1>, vector<64x128xf32>
    %54 = arith.mulf %43, %53 : vector<64x128xf32>
    %55 = arith.addf %54, %42 : vector<64x128xf32>
    %56 = arith.mulf %43, %48 : vector<64x128xf32>
    %c4_i32 = arith.constant 4 : i32
    %57 = vector.broadcast %c4_i32 : i32 to vector<64x128xi32>
    %58 = arith.cmpi sge, %30, %57 : vector<64x128xi32>
    %c4_i32_22 = arith.constant 4 : i32
    %59 = tpu.dynamic_rotate %56 by %c4_i32_22 dim 0 : vector<64x128xf32>, i32 -> vector<64x128xf32>
    %cst_23 = arith.constant 1.000000e+00 : f32
    %60 = vector.broadcast %cst_23 : f32 to vector<64x128xf32>
    %61 = arith.select %58, %59, %60 : vector<64x128xi1>, vector<64x128xf32>
    %c4_i32_24 = arith.constant 4 : i32
    %62 = vector.broadcast %c4_i32_24 : i32 to vector<64x128xi32>
    %63 = arith.cmpi sge, %30, %62 : vector<64x128xi32>
    %c4_i32_25 = arith.constant 4 : i32
    %64 = tpu.dynamic_rotate %55 by %c4_i32_25 dim 0 : vector<64x128xf32>, i32 -> vector<64x128xf32>
    %cst_26 = arith.constant 0.000000e+00 : f32
    %65 = vector.broadcast %cst_26 : f32 to vector<64x128xf32>
    %66 = arith.select %63, %64, %65 : vector<64x128xi1>, vector<64x128xf32>
    %67 = arith.mulf %56, %66 : vector<64x128xf32>
    %68 = arith.addf %67, %55 : vector<64x128xf32>
    %69 = arith.mulf %56, %61 : vector<64x128xf32>
    %c8_i32 = arith.constant 8 : i32
    %70 = vector.broadcast %c8_i32 : i32 to vector<64x128xi32>
    %71 = arith.cmpi sge, %30, %70 : vector<64x128xi32>
    %c8_i32_27 = arith.constant 8 : i32
    %72 = tpu.dynamic_rotate %69 by %c8_i32_27 dim 0 : vector<64x128xf32>, i32 -> vector<64x128xf32>
    %cst_28 = arith.constant 1.000000e+00 : f32
    %73 = vector.broadcast %cst_28 : f32 to vector<64x128xf32>
    %74 = arith.select %71, %72, %73 : vector<64x128xi1>, vector<64x128xf32>
    %c8_i32_29 = arith.constant 8 : i32
    %75 = vector.broadcast %c8_i32_29 : i32 to vector<64x128xi32>
    %76 = arith.cmpi sge, %30, %75 : vector<64x128xi32>
    %c8_i32_30 = arith.constant 8 : i32
    %77 = tpu.dynamic_rotate %68 by %c8_i32_30 dim 0 : vector<64x128xf32>, i32 -> vector<64x128xf32>
    %cst_31 = arith.constant 0.000000e+00 : f32
    %78 = vector.broadcast %cst_31 : f32 to vector<64x128xf32>
    %79 = arith.select %76, %77, %78 : vector<64x128xi1>, vector<64x128xf32>
    %80 = arith.mulf %69, %79 : vector<64x128xf32>
    %81 = arith.addf %80, %68 : vector<64x128xf32>
    %82 = arith.mulf %69, %74 : vector<64x128xf32>
    %c16_i32 = arith.constant 16 : i32
    %83 = vector.broadcast %c16_i32 : i32 to vector<64x128xi32>
    %84 = arith.cmpi sge, %30, %83 : vector<64x128xi32>
    %c16_i32_32 = arith.constant 16 : i32
    %85 = tpu.dynamic_rotate %82 by %c16_i32_32 dim 0 : vector<64x128xf32>, i32 -> vector<64x128xf32>
    %cst_33 = arith.constant 1.000000e+00 : f32
    %86 = vector.broadcast %cst_33 : f32 to vector<64x128xf32>
    %87 = arith.select %84, %85, %86 : vector<64x128xi1>, vector<64x128xf32>
    %c16_i32_34 = arith.constant 16 : i32
    %88 = vector.broadcast %c16_i32_34 : i32 to vector<64x128xi32>
    %89 = arith.cmpi sge, %30, %88 : vector<64x128xi32>
    %c16_i32_35 = arith.constant 16 : i32
    %90 = tpu.dynamic_rotate %81 by %c16_i32_35 dim 0 : vector<64x128xf32>, i32 -> vector<64x128xf32>
    %cst_36 = arith.constant 0.000000e+00 : f32
    %91 = vector.broadcast %cst_36 : f32 to vector<64x128xf32>
    %92 = arith.select %89, %90, %91 : vector<64x128xi1>, vector<64x128xf32>
    %93 = arith.mulf %82, %92 : vector<64x128xf32>
    %94 = arith.addf %93, %81 : vector<64x128xf32>
    %95 = arith.mulf %82, %87 : vector<64x128xf32>
    %c32_i32 = arith.constant 32 : i32
    %96 = vector.broadcast %c32_i32 : i32 to vector<64x128xi32>
    %97 = arith.cmpi sge, %30, %96 : vector<64x128xi32>
    %c32_i32_37 = arith.constant 32 : i32
    %98 = tpu.dynamic_rotate %95 by %c32_i32_37 dim 0 : vector<64x128xf32>, i32 -> vector<64x128xf32>
    %cst_38 = arith.constant 1.000000e+00 : f32
    %99 = vector.broadcast %cst_38 : f32 to vector<64x128xf32>
    %100 = arith.select %97, %98, %99 : vector<64x128xi1>, vector<64x128xf32>
    %c32_i32_39 = arith.constant 32 : i32
    %101 = vector.broadcast %c32_i32_39 : i32 to vector<64x128xi32>
    %102 = arith.cmpi sge, %30, %101 : vector<64x128xi32>
    %c32_i32_40 = arith.constant 32 : i32
    %103 = tpu.dynamic_rotate %94 by %c32_i32_40 dim 0 : vector<64x128xf32>, i32 -> vector<64x128xf32>
    %cst_41 = arith.constant 0.000000e+00 : f32
    %104 = vector.broadcast %cst_41 : f32 to vector<64x128xf32>
    %105 = arith.select %102, %103, %104 : vector<64x128xi1>, vector<64x128xf32>
    %106 = arith.mulf %95, %105 : vector<64x128xf32>
    %107 = arith.addf %106, %94 : vector<64x128xf32>
    %108 = arith.mulf %95, %100 : vector<64x128xf32>
    %c0_42 = arith.constant 0 : index
    %c0_43 = arith.constant 0 : index
    %109 = vector.load %arg7[%c0_42, %c0_43] : memref<1x128xf32, #tpu.memory_space<vmem>>, vector<1x128xf32>
    %110 = vector.broadcast %109 : vector<1x128xf32> to vector<64x128xf32>
    %111 = arith.mulf %108, %110 : vector<64x128xf32>
    %112 = arith.addf %111, %107 : vector<64x128xf32>
    %c0_44 = arith.constant 0 : index
    %c0_45 = arith.constant 0 : index
    %c0_46 = arith.constant 0 : index
    %113 = vector.load %arg6[%c0_44, %c0_45, %c0_46] : memref<1x64x128xf32, #tpu.memory_space<vmem>>, vector<1x64x128xf32>
    %114 = vector.shape_cast %113 : vector<1x64x128xf32> to vector<64x128xf32>
    %115 = vector.shape_cast %112 : vector<64x128xf32> to vector<1x64x128xf32>
    tpu.vector_store %arg6[%c0_44, %c0_45, %c0_46], %115 {strides = array<i32>} : memref<1x64x128xf32, #tpu.memory_space<vmem>>, vector<1x64x128xf32>,
    %116 = vector.extract_strided_slice %112 {offsets = [63, 0], sizes = [1, 128], strides = [1, 1]} : vector<64x128xf32> to vector<1x128xf32>
    %c0_47 = arith.constant 0 : index
    %c0_48 = arith.constant 0 : index
    %117 = vector.load %arg7[%c0_47, %c0_48] : memref<1x128xf32, #tpu.memory_space<vmem>>, vector<1x128xf32>
    tpu.vector_store %arg7[%c0_47, %c0_48], %116 {strides = array<i32>} : memref<1x128xf32, #tpu.memory_space<vmem>>, vector<1x128xf32>,
    return
  }
  func.func @transform_0(%arg0: i32, %arg1: i32) -> (i32, i32, i32) {
    %c0_i32 = arith.constant 0 : i32
    %c0_i32_0 = arith.constant 0 : i32
    return %arg0, %arg1, %c0_i32 : i32, i32, i32
  }
  func.func @transform_1(%arg0: i32, %arg1: i32) -> (i32, i32) {
    %c0_i32 = arith.constant 0 : i32
    %c0_i32_0 = arith.constant 0 : i32
    %c0_i32_1 = arith.constant 0 : i32
    return %c0_i32, %c0_i32_0 : i32, i32
  }
  func.func @transform_2(%arg0: i32, %arg1: i32) -> (i32, i32) {
    %c0_i32 = arith.constant 0 : i32
    %c0_i32_0 = arith.constant 0 : i32
    %c0_i32_1 = arith.constant 0 : i32
    return %c0_i32, %c0_i32_0 : i32, i32
  }
  func.func @transform_3(%arg0: i32, %arg1: i32) -> (i32, i32) {
    %c0_i32 = arith.constant 0 : i32
    %c0_i32_0 = arith.constant 0 : i32
    %c0_i32_1 = arith.constant 0 : i32
    return %c0_i32, %c0_i32_0 : i32, i32
  }
  func.func @transform_4(%arg0: i32, %arg1: i32) -> (i32, i32, i32) {
    %c0_i32 = arith.constant 0 : i32
    %c0_i32_0 = arith.constant 0 : i32
    return %arg0, %arg1, %c0_i32 : i32, i32, i32
  }
}

</mosaic_0001>

<bundles_post_ra>
// kernel: tpu_custom_call.1
= control target key start
LH: loop header
LB: loop body
LE: loop exit
PB: predicated region body
PF: predicated region fallthrough
CT: control target
= control target key end

     0   :  { %s2465_s0 = inlined_call_operand.hbm [shape: f32[2,128,128], index: 0, kind: input, shape index: {}]   ;;  %s2466_s1 = inlined_call_operand.hbm [shape: bf16[128,256], index: 1, kind: input, shape index: {}]   ;;  %s2467_s2 = inlined_call_operand.vmem [shape: f32[1,256], index: 2, kind: input, shape index: {}]   ;;  %s2468_s3 = inlined_call_operand.vmem [shape: f32[1,128], index: 3, kind: input, shape index: {}]   ;;  %s2469_s4 = inlined_call_operand.hbm [shape: f32[2,128,128], index: 4, kind: output, shape index: {}]  }
   0x1   :  { %2478 = sst [smem:[#allocation16_spill]] %s2466_s1 }
   0x2   :  { %2479 = sst [smem:[#allocation17_spill]] %s2469_s4 }
   0x3   :  { %9 = vsyncpa [#allocation4], 0 }
   0x4   :  { %11 = vsyncpa [#allocation4 + $0x1], 0 }
   0x5   :  { %12 = vsyncpa [#allocation7], 0 }
   0x6   :  { %13 = vsyncpa [#allocation5], 0 }
   0x7   :  { %15 = vsyncpa [#allocation5 + $0x1], 0  ;;  %s1692_s15 = smov 0   ;;  %s1694_s16 = smov 0  }
   0x8   :  { %s1696_s17 = smov 0   ;;  %s1698_s18 = smov 0  }
   0x9   :  { %s1700_s19 = smov 0   ;;  %s1702_s20 = smov 0  }
   0xa   :  { %s1704_s21 = smov 0   ;;  %s1706_s22 = smov 0  }
   0xb LB: > { %2480 = sst [smem:[#allocation12_spill]] %s1628_s15  ;;  %s1217_s23 = sadd.s32 4294967295, %s1656_s22   ;;  %s1656_s22 = sphi %s1706_s22, %s21_s22   ;;  %s1652_s21 = sphi %s1704_s21, %s2506_s21   ;;  %s1648_s20 = sphi %s1702_s20, %s2501_s20   ;;  %s1644_s19 = sphi %s1700_s19, %s2505_s19   ;;  %s1640_s18 = sphi %s1698_s18, %s2500_s18   ;;  %s1636_s17 = sphi %s1696_s17, %s2504_s17   ;;  %s1632_s16 = sphi %s1694_s16, %s2503_s16   ;;  %s1628_s15 = sphi %s1692_s15, %s2502_s15  }
   0xc   : > { %2481 = sst [smem:[#allocation13_spill]] %s1648_s20  ;;  %s1218_s24 = sadd.s32 4294967294, %s1656_s22  }
   0xd   : > { %p55_p0 = scmp.ne.s32.totalorder %s1632_s16, %s1628_s15  ;;  %p1736_p1 = scmp.eq.s32.totalorder %s1217_s23, 0 }
   0xe   : > { %p1740_p2 = scmp.eq.s32.totalorder %s1217_s23, 3  ;;  %p150_p3 = scmp.eq.s32.totalorder %s1218_s24, 3 }
   0xf   : > { %p1746_p4 = por %p1736_p1, %p55_p0  ;;  %p1219_p5 = scmp.ge.s32.totalorder %s1656_s22, 1 }
  0x10   : > { %p1751_p6 = por %p150_p3, %p55_p0  ;;  %p157_p7 = scmp.lt.s32.totalorder %s1656_s22, 5 }
  0x11   : > { %s2484_s27 = scalar_select %p1746_p4, 1, 0 }
  0x12   : > { %s2485_s28 = scalar_select %p1751_p6, 1, 0 }
  0x13   : > { %p1756_p8 = pnand %p1219_p5, %p157_p7  ;;  %s1658_s30 = smov [#allocation6]  }
  0x14   : > { %2486 = sst [smem:[#allocation14_spill]] %s2485_s28  ;;  %s169_s5 = sshll.u32 %s1658_s30, 4  ;;  %s170_s5 = int_to_ptr.vmem [resolvable:$true] %s169_s5 }
  0x15   : > { %p1295_p9 = pneg %p1756_p8  ;;  %s1513_s6 = scalar_lea.vmem %s170_s5, 2048 }
  0x16   : > { %p1514_p12 = scmp.ne.s32.totalorder %s170_s5, %s1513_s6  ;;  %p1521_p3 = scmp.lt.s32.totalorder %s170_s5, %s170_s5 }
  0x17   : > { %p1296_p10 = pnand %p1295_p9, %p1736_p1  ;;  %p1522_p6 = scmp.lt.s32.totalorder %s1513_s6, %s1513_s6 }
  0x19   : > { %p1504_p11 = pneg %p1296_p10  ;;  %p1523_p4 = por %p1522_p6, %p1521_p3 }
  0x1b   : > { %p1516_p13 = pnand %p1514_p12, %p1504_p11 }
  0x1d   : > { %p1517_p0 = pneg %p1516_p13 }
  0x1f   : > { %p1524_p5 = pnand %p1523_p4, %p1517_p0 }
  0x21   : > { %1527 = shalt.err (!%p1524_p5)
}
  0x22   : > { %s2471_s7 = smov 128   ;;  %s2472_s8 = smov 8  }
  0x23   : > { %s2488_s1 = sld [smem:[#allocation16_spill]]  ;;  %s30_s11 = sadd.s32 1, %s1648_s20 }
  0x24   : > { %p31_p4 = scmp.ge.s32.totalorder %s30_s11, 2  ;;  %s33_s12 = sadd.s32 1, %s1652_s21 }
  0x25   : > { %s42_s13 = sadd.s32 1, %s1636_s17  ;;  %p49_p6 = scmp.ne.s32.totalorder %s1636_s17, %s1632_s16 }
  0x26   : > { %s2508_s11 = smov (%p31_p4, %s30_s11), 0  ;;  %s2510_s12 = smov (!%p31_p4, %s33_s12), %s1652_s21 }
  0x27   : > { %2489 = sst [smem:[#allocation15_spill]] %s2508_s11  ;;  %s38_s14 = ssub.s32 %s1648_s20, %s2508_s11 }
  0x28   : > { %p50_p7 = scmp.eq.s32.totalorder %s1656_s22, 0  ;;  %p35_p9 = scmp.ge.s32.totalorder %s2510_s12, 2 }
  0x29   : > { %1298 = dma.hbm_to_vmem [thread:$0]  (!%p1296_p10), %s2488_s1, 2048, %s170_s5, [#allocation7], %s2471_s7, %s2471_s7, %s2472_s8  }
  0x2a   : > { %p1783_p11 = por %p1740_p2, %p49_p6  ;;  %p1787_p10 = por %p50_p7, %p49_p6 }
  0x2b   : > { %p1308_p12 = scmp.lt.s32.totalorder %s1656_s22, 4  ;;  %s2512_s12 = smov (%p35_p9, %s2510_s12), 0 }
  0x2c   : > { %s189_s30 = sand.u32 1, %s1636_s17   ;;  %s1223_s5 = sshll.u32 %s1648_s20, 3 }
  0x2d   : > { %s37_s6 = ssub.s32 %s1652_s21, %s2512_s12  ;;  %s1222_s10 = sshll.u32 %s189_s30, 6 }
  0x2e   : > { %s39_s9 = sor.u32 %s38_s14, %s37_s6  ;;  %s1224_s26 = sshll.u32 %s1652_s21, 4 }
  0x2f   : > { %p40_p13 = scmp.eq.s32.totalorder %s39_s9, 0  ;;  %s193_s7 = scalar_lea.vmem [#allocation3], %s1222_s10 }
  0x30   : > { %s202_s8 = sshll.u32 %s193_s7, 4  ;;  %s199_s11 = sadd.s32 %s1224_s26, %s1223_s5  ;;  %s203_s8 = int_to_ptr.vmem [resolvable:$true] %s202_s8 }
  0x31   : > { %s1800_s1 = scalar_select %p40_p13, %s1636_s17, %s42_s13  }
  0x32   : > { %s1225_s28 = sshll.u32 %s199_s11, 7  ;;  %p1806_p2 = pnand %p1308_p12, %p1787_p10 }
  0x33   : > { %s201_s14 = scalar_lea.hbm %s2465_s0, %s1225_s28  ;;  %s190_s6 = scalar_lea.sflag [#allocation4], %s189_s30 }
  0x34   : > { %p1530_p0 = pneg %p1806_p2  ;;  %s1541_s7 = scalar_lea.vmem %s203_s8, 1024 }
  0x35   : > { %p1542_p3 = scmp.ne.s32.totalorder %s203_s8, %s1541_s7  ;;  %s1661_s13 = smov [#allocation3]  }
  0x36   : > { %s1546_s11 = sshll.u32 %s1661_s13, 4  ;;  %s1547_s11 = int_to_ptr.vmem [resolvable:$false] %s1546_s11 }
  0x37   : > { %p1544_p5 = pnand %p1542_p3, %p1530_p0  ;;  %s1548_s24 = scalar_lea.vmem %s1547_s11, 2048 }
  0x38   : > { %p1549_p6 = scmp.lt.s32.totalorder %s203_s8, %s1547_s11  ;;  %p1550_p7 = scmp.lt.s32.totalorder %s1548_s24, %s1541_s7 }
  0x39   : > { %p1545_p4 = pneg %p1544_p5 }
  0x3a   : > { %p1551_p9 = por %p1550_p7, %p1549_p6 }
  0x3c   : > { %p1552_p10 = pnand %p1551_p9, %p1545_p4 }
  0x3e   : > { %1555 = shalt.err (!%p1552_p10)
}
  0x3f   : > { %s2493_s4 = smov 8   ;;  %s2494_s20 = smov 128  }
  0x40   : > { %1302 = dma.hbm_to_vmem [thread:$0]  (!%p1806_p2), %s201_s14, 1024, %s203_s8, %s190_s6, %s2494_s20, %s2494_s20, %s2493_s4  }
  0x41   : > { %214 = sbr.rel (%p1756_p8) target bundleno = 468 (0x1d4), region = 36  ;;  %s1823_s28 = sand.u32 (!%p1756_p8), 1, %s1632_s16  }
  0x42   : > { %s1227_s30 = sshll.u32 (!%p1756_p8), %s1823_s28, 6  ;;  %s217_s5 = scalar_lea.sflag (!%p1756_p8), [#allocation4], %s1823_s28 }
  0x43   : > { %s1827_s9 = scalar_lea.vmem (!%p1756_p8), [#allocation3], %s1227_s30  ;;  %p2495_p12 = scmp.ne.s32.totalorder (!%p1756_p8), %s2484_s27, 0 }
  0x46   : > { %1615 = dma.done.wait (%p2495_p12), %s217_s5, 1024  }
  0x47   : > { %1617 = vsyncadd (%p2495_p12), %s217_s5, 4294966272 }
  0x48   : > { %1619 = dma.done.wait (%p1736_p1), [#allocation7], 2048  }
  0x49   : > { %1621 = vsyncadd (%p1736_p1), [#allocation7], 4294965248  ;;  %s1837_s15 = scalar_lea.vmem [#allocation8], %s1227_s30  ;;  %p1230_p8 = scmp.ne.s32.totalorder %s1640_s18, 0 }
  0x4b   : > { %255 = sbr.rel (%p1230_p8) target bundleno = 82 (0x52), region = 48 }
  0x50   : > { %v1662_v0 = vmov 0.0  }
  0x51   : > { %256 = vst [vmem:[#allocation2] sm:$0x1] %v1662_v0 }
  0x52 PF: > { %v1382_v1 = vld [vmem:[#allocation6 + $0x74] ss:$8 sps:$4 sm:$0xff]   ;;  %v1384_v2 = vld [vmem:[#allocation6 + $0x70] ss:$8 sps:$4 sm:$0xff]   ;;  %v1663_v3 = vmov 0   ;;  %v1841_v18 = vld [vmem:[%s1827_s9] sm:$0xff]  ;;  %v287_v30 = vlaneseq }
  0x53   : > { %409 = vmatprep.mubr.bf16.mxu0 %v1663_v3  ;;  %429 = vmatprep.mubr.bf16.mxu1 %v1663_v3  ;;  %v1385_v4 = vld [vmem:[#allocation6 + $0x64] ss:$8 sps:$4 sm:$0xff]   ;;  %v1387_v5 = vld [vmem:[#allocation6 + $0x60] ss:$8 sps:$4 sm:$0xff]   ;;  %v1388_v6 = vld [vmem:[#allocation6 + $0x54] ss:$8 sps:$4 sm:$0xff]  }
  0x54   : > { %377 = vmatprep.subr.bf16.mxu0 %v1382_v1  ;;  %1271 = vmatprep.subr.bf16.mxu1 %v1382_v1  ;;  %v1390_v7 = vld [vmem:[#allocation6 + $0x50] ss:$8 sps:$4 sm:$0xff]   ;;  %v1391_v8 = vld [vmem:[#allocation6 + $0x44] ss:$8 sps:$4 sm:$0xff]   ;;  %v1393_v9 = vld [vmem:[#allocation6 + $0x40] ss:$8 sps:$4 sm:$0xff]  }
  0x55   : > { %378 = vmatpush1.bf16.msra.mxu0 %v1384_v2  ;;  %1279 = vmatpush1.bf16.msra.mxu1 %v1384_v2  ;;  %v1394_v10 = vld [vmem:[#allocation6 + $0x34] ss:$8 sps:$4 sm:$0xff]   ;;  %v1396_v11 = vld [vmem:[#allocation6 + $0x30] ss:$8 sps:$4 sm:$0xff]   ;;  %v1397_v12 = vld [vmem:[#allocation6 + $0x24] ss:$8 sps:$4 sm:$0xff]  }
  0x56   : > { %379 = vmatprep.subr.bf16.mxu0 %v1385_v4  ;;  %1272 = vmatprep.subr.bf16.mxu1 %v1385_v4  ;;  %v1399_v13 = vld [vmem:[#allocation6 + $0x20] ss:$8 sps:$4 sm:$0xff]   ;;  %v1400_v14 = vld [vmem:[#allocation6 + $0x14] ss:$8 sps:$4 sm:$0xff]   ;;  %v1402_v15 = vld [vmem:[#allocation6 + $0x10] ss:$8 sps:$4 sm:$0xff]  }
  0x57   : > { %v1403_v16 = vld [vmem:[#allocation6 + $0x4] ss:$8 sps:$4 sm:$0xff]   ;;  %v1405_v17 = vld [vmem:[#allocation6] ss:$8 sps:$4 sm:$0xff]   ;;  %v1857_v24 = vld [vmem:[%s1827_s9 + $0x10] sm:$0xff]  ;;  %v1872_v31 = vshrl.u32 %v287_v30, 7 }
  0x58   : > { %v1844_v19 = vld [vmem:[%s1827_s9 + $0x8] sm:$0xff]  ;;  %v1847_v20 = vld [vmem:[%s1827_s9 + $0x20] sm:$0xff]  ;;  %v1860_v25 = vld [vmem:[%s1827_s9 + $0x18] sm:$0xff]  ;;  %s1266_s10 = sshll.u32 %s1640_s18, 3  ;;  %s1267_s26 = sshll.u32 %s1644_s19, 4 }
  0x59   : > { %380 = vmatpush1.bf16.msra.mxu0 %v1387_v5  ;;  %1280 = vmatpush1.bf16.msra.mxu1 %v1387_v5  ;;  %v1850_v21 = vld [vmem:[%s1827_s9 + $0x28] sm:$0xff]  ;;  %v265_v22 = vpack.c.bf16 %v1844_v19, %v1841_v18  ;;  %v1863_v26 = vld [vmem:[%s1827_s9 + $0x30] sm:$0xff]  ;;  %v1866_v27 = vld [vmem:[%s1827_s9 + $0x38] sm:$0xff]  ;;  %v266_v28 = vpack.c.bf16 %v1860_v25, %v1857_v24  ;;  %v289_v32 = vsub.s32 0, %v1872_v31  ;;  %v293_v37 = vsub.s32 1, %v1872_v31  ;;  %s2394_s14 = sadd.s32 %s1267_s26, %s1266_s10  ;;  %s1117_s18 = sshll.u32 %s1837_s15, 4  ;;  %s2402_s18 = int_to_ptr.vmem [resolvable:$true] %s1117_s18 }
  0x5a   : > { %381 = vmatprep.subr.bf16.mxu0 %v1388_v6  ;;  %1273 = vmatprep.subr.bf16.mxu1 %v1388_v6  ;;  %v267_v23 = vpack.c.bf16 %v1850_v21, %v1847_v20  ;;  %v268_v29 = vpack.c.bf16 %v1866_v27, %v1863_v26  ;;  %v285_v33 = vld [vmem:[%s2467_s2] sm:$0x3]  ;;  %vm698_vm0 = vcmp.lt.s32.totalorder %v1872_v31, 1  ;;  %vm779_vm1 = vcmp.lt.s32.totalorder %v1872_v31, 2  ;;  %s1268_s19 = sshll.u32 %s2394_s14, 7  ;;  %s2496_s13 = sld [smem:[#allocation17_spill]] }
  0x5b   : > { %v290_v34 = vrot.slane %v285_v33, %v289_v32  ;;  %v294_v44 = vrot.slane %v285_v33, %v293_v37  ;;  %vm860_vm9 = vcmp.lt.s32.totalorder %v1872_v31, 4  ;;  %s1102_s24 = scalar_lea.sflag [#allocation5], %s1823_s28  ;;  %s1556_s4 = scalar_lea.vmem %s2402_s18, 1024 }
  0x5c   : > { %p1557_p1 = scmp.ne.s32.totalorder %s2402_s18, %s1556_s4  ;;  %s1664_s20 = smov [#allocation8]  }
  0x5d   : > { %382 = vmatpush1.bf16.msra.mxu0 %v1390_v7  ;;  %1281 = vmatpush1.bf16.msra.mxu1 %v1390_v7  ;;  %s1560_s30 = sshll.u32 %s1664_s20, 4  ;;  %s1561_s30 = int_to_ptr.vmem [resolvable:$false] %s1560_s30 }
  0x5e   : > { %383 = vmatprep.subr.bf16.mxu0 %v1391_v8  ;;  %1274 = vmatprep.subr.bf16.mxu1 %v1391_v8  ;;  %p1558_p13 = pnand %p1557_p1, %p1783_p11  ;;  %s1562_s5 = scalar_lea.vmem %s1561_s30, 2048 }
  0x5f   : > { %p1563_p0 = scmp.lt.s32.totalorder %s2402_s18, %s1561_s30  ;;  %p1564_p3 = scmp.lt.s32.totalorder %s1562_s5, %s1556_s4 }
  0x60   : > { %s2410_s11 = scalar_lea.hbm %s2496_s13, %s1268_s19  ;;  %p1559_p2 = pneg %p1558_p13 }
  0x61   : > { %384 = vmatpush1.bf16.msra.mxu0 %v1393_v9  ;;  %1282 = vmatpush1.bf16.msra.mxu1 %v1393_v9  ;;  %p1565_p5 = por %p1564_p3, %p1563_p0 }
  0x62   : > { %385 = vmatprep.subr.bf16.mxu0 %v1394_v10  ;;  %1275 = vmatprep.subr.bf16.mxu1 %v1394_v10 }
  0x63   : > { %p1566_p4 = pnand %p1565_p5, %p1559_p2 }
  0x65   : > { %386 = vmatpush1.bf16.msra.mxu0 %v1396_v11  ;;  %1283 = vmatpush1.bf16.msra.mxu1 %v1396_v11 }
  0x66   : > { %387 = vmatprep.subr.bf16.mxu0 %v1397_v12  ;;  %1276 = vmatprep.subr.bf16.mxu1 %v1397_v12 }
  0x69   : > { %388 = vmatpush1.bf16.msra.mxu0 %v1399_v13  ;;  %1284 = vmatpush1.bf16.msra.mxu1 %v1399_v13 }
  0x6a   : > { %389 = vmatprep.subr.bf16.mxu0 %v1400_v14  ;;  %1277 = vmatprep.subr.bf16.mxu1 %v1400_v14 }
  0x6d   : > { %390 = vmatpush1.bf16.msra.mxu0 %v1402_v15  ;;  %1285 = vmatpush1.bf16.msra.mxu1 %v1402_v15 }
  0x6e   : > { %391 = vmatprep.subr.bf16.mxu0 %v1403_v16  ;;  %1278 = vmatprep.subr.bf16.mxu1 %v1403_v16 }
  0x71   : > { %392 = vmatpush1.bf16.msra.mxu0 %v1405_v17  ;;  %1286 = vmatpush1.bf16.msra.mxu1 %v1405_v17 }
  0x74   : > { %410 = vmatmul.mubr.bf16.vlgmr.msra.gmra.mxu0 %v265_v22  ;;  %430 = vmatmul.mubr.bf16.vlgmr.msra.gmra.mxu1 %v267_v23 }
  0x75   : > { %419 = vmatprep.mubr.bf16.mxu0 %v1663_v3  ;;  %439 = vmatprep.mubr.bf16.mxu1 %v1663_v3 }
  0x7c   : > { %420 = vmatmul.mubr.bf16.gmra.mxu0 %v266_v28  ;;  %440 = vmatmul.mubr.bf16.gmra.mxu1 %v268_v29 }
 0x134   : > { %v411_v35 = vpop.f32.mrf.mxu0  ;;  %v431_v36 = vpop.f32.mrf.mxu1 }
 0x135   : > { %v412_v38 = vadd.f32 %v411_v35, %v290_v34  ;;  %v432_v39 = vadd.f32 %v431_v36, %v290_v34 }
 0x136   : > { %v413_v40 = vpop.f32.mrf.mxu0  ;;  %v433_v41 = vpop.f32.mrf.mxu1 }
 0x137   : > { %v1247_v42 = vmul.f32 -1.442695, %v412_v38  ;;  %v1255_v43 = vmul.f32 -1.442695, %v432_v39  ;;  %v414_v51 = vadd.f32 %v413_v40, %v294_v44  ;;  %v434_v53 = vadd.f32 %v433_v41, %v294_v44 }
 0x138   : > { %v415_v45 = vpop.f32.mrf.mxu0  ;;  %v435_v46 = vpop.f32.mrf.mxu1 }
 0x139   : > { %1406 = vpow2.f32 %v1247_v42  ;;  %v416_v47 = vadd.f32 %v415_v45, %v290_v34  ;;  %v436_v48 = vadd.f32 %v435_v46, %v290_v34  ;;  %v1248_v61 = vmul.f32 -1.442695, %v414_v51 }
 0x13a   : > { %1408 = vpow2.f32 %v1255_v43  ;;  %v417_v49 = vpop.f32.mrf.mxu0  ;;  %v437_v50 = vpop.f32.mrf.mxu1  ;;  %v1256_v0 = vmul.f32 -1.442695, %v434_v53 }
 0x13b   : > { %v1249_v52 = vmul.f32 -1.442695, %v416_v47  ;;  %v1257_v54 = vmul.f32 -1.442695, %v436_v48  ;;  %v418_v62 = vadd.f32 %v417_v49, %v294_v44  ;;  %v438_v1 = vadd.f32 %v437_v50, %v294_v44  ;;  %v1263_v48 = vld [vmem:[%s2468_s3] ss:$0 sm:$0xff] }
 0x13c   : > { %v421_v55 = vpop.f32.mrf.mxu0  ;;  %v441_v56 = vpop.f32.mrf.mxu1 }
 0x13d   : > { %1410 = vpow2.f32 %v1249_v52  ;;  %v422_v57 = vadd.f32 %v421_v55, %v290_v34  ;;  %v442_v58 = vadd.f32 %v441_v56, %v290_v34  ;;  %v1250_v7 = vmul.f32 -1.442695, %v418_v62 }
 0x13e   : > { %1412 = vpow2.f32 %v1257_v54  ;;  %v423_v59 = vpop.f32.mrf.mxu0  ;;  %v443_v60 = vpop.f32.mrf.mxu1  ;;  %v1258_v10 = vmul.f32 -1.442695, %v438_v1 }
 0x13f   : > { %v1251_v63 = vmul.f32 -1.442695, %v422_v57  ;;  %v1259_v2 = vmul.f32 -1.442695, %v442_v58  ;;  %v424_v8 = vadd.f32 %v423_v59, %v294_v44  ;;  %v444_v11 = vadd.f32 %v443_v60, %v294_v44 }
 0x140   : > { %v425_v3 = vpop.f32.mrf.mxu0  ;;  %v445_v4 = vpop.f32.mrf.mxu1 }
 0x141   : > { %1414 = vpow2.f32 %v1251_v63  ;;  %v426_v5 = vadd.f32 %v425_v3, %v290_v34  ;;  %v446_v6 = vadd.f32 %v445_v4, %v290_v34  ;;  %v1252_v22 = vmul.f32 -1.442695, %v424_v8 }
 0x142   : > { %1416 = vpow2.f32 %v1259_v2  ;;  %v427_v13 = vpop.f32.mrf.mxu0  ;;  %v447_v14 = vpop.f32.mrf.mxu1  ;;  %v1260_v29 = vmul.f32 -1.442695, %v444_v11 }
 0x143   : > { %1418 = vpow2.f32 %v1248_v61  ;;  %v1253_v9 = vmul.f32 -1.442695, %v426_v5  ;;  %v1261_v12 = vmul.f32 -1.442695, %v446_v6  ;;  %v428_v23 = vadd.f32 %v427_v13, %v294_v44 }
 0x144   : > { %1420 = vpow2.f32 %v1256_v0  ;;  %v448_v30 = vadd.f32 %v447_v14, %v294_v44 }
 0x145   : > { %1422 = vpow2.f32 %v1253_v9  ;;  %v1254_v35 = vmul.f32 -1.442695, %v428_v23 }
 0x146   : > { %v1407_v15 = vpop.eup %1406  ;;  %1424 = vpow2.f32 %v1261_v12  ;;  %v1262_v37 = vmul.f32 -1.442695, %v448_v30 }
 0x147   : > { %v1409_v16 = vpop.eup %1408  ;;  %v498_v17 = vadd.f32 1.0, %v1407_v15  ;;  %1426 = vpow2.f32 %v1250_v7 }
 0x148   : > { %v506_v28 = vadd.f32 1.0, %v1409_v16  ;;  %1428 = vpow2.f32 %v1258_v10 }
 0x149   : > { %1430 = vrcp.f32 %v498_v17 }
 0x14a   : > { %v1411_v32 = vpop.eup %1410  ;;  %1432 = vrcp.f32 %v506_v28 }
 0x14b   : > { %v1413_v33 = vpop.eup %1412  ;;  %v500_v34 = vadd.f32 1.0, %v1411_v32  ;;  %1434 = vpow2.f32 %v1252_v22 }
 0x14c   : > { %v508_v36 = vadd.f32 1.0, %v1413_v33  ;;  %1436 = vpow2.f32 %v1260_v29 }
 0x14d   : > { %1438 = vrcp.f32 %v500_v34 }
 0x14e   : > { %v1415_v38 = vpop.eup %1414  ;;  %1440 = vrcp.f32 %v508_v36 }
 0x14f   : > { %v1417_v39 = vpop.eup %1416  ;;  %v502_v40 = vadd.f32 1.0, %v1415_v38  ;;  %1442 = vpow2.f32 %v1254_v35 }
 0x150   : > { %v1419_v41 = vpop.eup %1418  ;;  %v510_v42 = vadd.f32 1.0, %v1417_v39  ;;  %1444 = vpow2.f32 %v1262_v37 }
 0x151   : > { %v1421_v43 = vpop.eup %1420  ;;  %1446 = vrcp.f32 %v502_v40  ;;  %v499_v51 = vadd.f32 1.0, %v1419_v41 }
 0x152   : > { %v1423_v44 = vpop.eup %1422  ;;  %1448 = vrcp.f32 %v510_v42  ;;  %v507_v53 = vadd.f32 1.0, %v1421_v43 }
 0x153   : > { %v1425_v45 = vpop.eup %1424  ;;  %v504_v46 = vadd.f32 1.0, %v1423_v44 }
 0x154   : > { %v1427_v47 = vpop.eup %1426  ;;  %v512_v49 = vadd.f32 1.0, %v1425_v45 }
 0x155   : > { %v1429_v50 = vpop.eup %1428  ;;  %1450 = vrcp.f32 %v504_v46  ;;  %v501_v60 = vadd.f32 1.0, %v1427_v47 }
 0x156   : > { %v1431_v52 = vpop.eup %1430  ;;  %1452 = vrcp.f32 %v512_v49  ;;  %v509_v63 = vadd.f32 1.0, %v1429_v50 }
 0x157   : > { %v1433_v54 = vpop.eup %1432  ;;  %v553_v55 = vmul.f32 %v1431_v52, %v1263_v48  ;;  %1454 = vrcp.f32 %v499_v51 }
 0x158   : > { %v1435_v56 = vpop.eup %1434  ;;  %v557_v57 = vmul.f32 %v1433_v54, %v1263_v48  ;;  %1456 = vrcp.f32 %v507_v53 }
 0x159   : > { %v1437_v58 = vpop.eup %1436  ;;  %v561_v59 = vmul.f32 1.442695, %v553_v55  ;;  %v503_v6 = vadd.f32 1.0, %v1435_v56 }
 0x15a   : > { %v1439_v61 = vpop.eup %1438  ;;  %v569_v62 = vmul.f32 1.442695, %v557_v57  ;;  %v511_v9 = vadd.f32 1.0, %v1437_v58 }
 0x15b   : > { %v1441_v0 = vpop.eup %1440  ;;  %1458 = vpow2.f32 %v561_v59  ;;  %v554_v1 = vmul.f32 %v1439_v61, %v1263_v48 }
 0x15c   : > { %v1443_v2 = vpop.eup %1442  ;;  %1460 = vpow2.f32 %v569_v62  ;;  %v558_v3 = vmul.f32 %v1441_v0, %v1263_v48 }
 0x15d   : > { %v1445_v4 = vpop.eup %1444  ;;  %v563_v5 = vmul.f32 1.442695, %v554_v1  ;;  %1462 = vrcp.f32 %v501_v60  ;;  %v505_v14 = vadd.f32 1.0, %v1443_v2 }
 0x15e   : > { %v1447_v7 = vpop.eup %1446  ;;  %v571_v8 = vmul.f32 1.442695, %v558_v3  ;;  %1464 = vrcp.f32 %v509_v63  ;;  %v513_v17 = vadd.f32 1.0, %v1445_v4 }
 0x15f   : > { %v1449_v10 = vpop.eup %1448  ;;  %1466 = vpow2.f32 %v563_v5  ;;  %v555_v11 = vmul.f32 %v1447_v7, %v1263_v48 }
 0x160   : > { %1468 = vpow2.f32 %v571_v8  ;;  %v559_v12 = vmul.f32 %v1449_v10, %v1263_v48 }
 0x161   : > { %v565_v13 = vmul.f32 1.442695, %v555_v11  ;;  %1470 = vrcp.f32 %v503_v6 }
 0x162   : > { %v1451_v15 = vpop.eup %1450  ;;  %v573_v16 = vmul.f32 1.442695, %v559_v12  ;;  %1472 = vrcp.f32 %v511_v9 }
 0x163   : > { %v1453_v22 = vpop.eup %1452  ;;  %1474 = vpow2.f32 %v565_v13  ;;  %v556_v23 = vmul.f32 %v1451_v15, %v1263_v48 }
 0x164   : > { %1476 = vpow2.f32 %v573_v16  ;;  %v560_v28 = vmul.f32 %v1453_v22, %v1263_v48  ;;  %v1455_v30 = vpop.eup %1454 }
 0x165   : > { %v567_v29 = vmul.f32 1.442695, %v556_v23  ;;  %1478 = vrcp.f32 %v505_v14  ;;  %v1457_v32 = vpop.eup %1456  ;;  %v1906_v52 = vmul.f32 %v1455_v30, %v1841_v18 }
 0x166   : > { %1480 = vrcp.f32 %v513_v17  ;;  %v575_v34 = vmul.f32 1.442695, %v560_v28  ;;  %v1914_v54 = vmul.f32 %v1457_v32, %v1847_v20 }
 0x167   : > { %1482 = vpow2.f32 %v567_v29 }
 0x168   : > { %v1882_v33 = vpop.eup %1458  ;;  %1484 = vpow2.f32 %v575_v34 }
 0x169   : > { %v1884_v35 = vpop.eup %1460  ;;  %v577_v36 = vmul.f32 %v1882_v33, %v1882_v33  ;;  %v690_v49 = vrot.slane %v1882_v33, 7 }
 0x16a   : > { %v1463_v37 = vpop.eup %1462  ;;  %v581_v38 = vmul.f32 %v1884_v35, %v1884_v35  ;;  %v694_v62 = vrot.slane %v1884_v35, 7 }
 0x16b   : > { %v1465_v39 = vpop.eup %1464  ;;  %v585_v40 = vsub.f32 1.0, %v577_v36  ;;  %v1917_v55 = vmul.f32 %v1463_v37, %v1844_v19 }
 0x16c   : > { %v1890_v41 = vpop.eup %1466  ;;  %v589_v42 = vsub.f32 1.0, %v581_v38  ;;  %v1940_v5 = vmul.f32 %v1465_v39, %v1850_v21 }
 0x16d   : > { %v1892_v43 = vpop.eup %1468  ;;  %v1894_v44 = vmax.f32 %v585_v40, 0.0  ;;  %v578_v45 = vmul.f32 %v1890_v41, %v1890_v41  ;;  %v691_v50 = vrot.slane %v1890_v41, 7 }
 0x16e   : > { %v1471_v46 = vpop.eup %1470  ;;  %v1898_v47 = vmax.f32 %v589_v42, 0.0  ;;  %v582_v48 = vmul.f32 %v1892_v43, %v1892_v43  ;;  %v695_v56 = vrot.slane %v1892_v43, 7 }
 0x16f   : > { %v1473_v51 = vpop.eup %1472  ;;  %1486 = vrsqrt.f32 %v1894_v44  ;;  %v586_v18 = vsub.f32 1.0, %v578_v45  ;;  %v705_v20 = vsel %vm698_vm0, %v690_v49, %v691_v50  ;;  %v1952_v10 = vmul.f32 %v1471_v46, %v1857_v24 }
 0x170   : > { %v1910_v53 = vpop.eup %1474  ;;  %1488 = vrsqrt.f32 %v1898_v47  ;;  %v590_v58 = vsub.f32 1.0, %v582_v48  ;;  %v1943_v6 = vmul.f32 %v1890_v41, %v705_v20  ;;  %v701_v11 = vsel %vm698_vm0, %v694_v62, %v695_v56 }
 0x171   : > { %v1920_v57 = vpop.eup %1476  ;;  %v579_v59 = vmul.f32 %v1910_v53, %v1910_v53  ;;  %v692_v60 = vrot.slane %v1910_v53, 7  ;;  %v1933_v1 = vmax.f32 %v586_v18, 0.0  ;;  %v1962_v12 = vmul.f32 %v1473_v51, %v1863_v26 }
 0x172   : > { %v1479_v61 = vpop.eup %1478  ;;  %v583_v19 = vmul.f32 %v1920_v57, %v1920_v57  ;;  %v696_v63 = vrot.slane %v1920_v57, 7  ;;  %v1935_v2 = vmax.f32 %v590_v58, 0.0  ;;  %v772_v15 = vrot.slane %v1943_v6, 6 }
 0x173   : > { %v1481_v0 = vpop.eup %1480  ;;  %v587_v3 = vsub.f32 1.0, %v579_v59  ;;  %v704_v4 = vsel %vm698_vm0, %v691_v50, %v692_v60  ;;  %1490 = vrsqrt.f32 %v1933_v1  ;;  %v1965_v13 = vmul.f32 %v1479_v61, %v1860_v25 }
 0x174   : > { %v1946_v7 = vmul.f32 %v1910_v53, %v704_v4  ;;  %v591_v8 = vsub.f32 1.0, %v583_v19  ;;  %v1948_v9 = vpop.eup %1482  ;;  %v700_v21 = vsel %vm698_vm0, %v695_v56, %v696_v63  ;;  %1492 = vrsqrt.f32 %v1935_v2 }
 0x175   : > { %v1968_v14 = vmul.f32 %v1481_v0, %v1866_v27  ;;  %v1970_v24 = vmax.f32 %v587_v3, 0.0  ;;  %v1977_v22 = vmul.f32 %v1892_v43, %v701_v11  ;;  %v1980_v26 = vmul.f32 %v1920_v57, %v700_v21  ;;  %v1985_v23 = vpop.eup %1484 }
 0x176   : > { %v773_v16 = vrot.slane %v1946_v7, 6  ;;  %v1974_v17 = vmax.f32 %v591_v8, 0.0  ;;  %v580_v25 = vmul.f32 %v1948_v9, %v1948_v9  ;;  %v693_v27 = vrot.slane %v1948_v9, 7 }
 0x177   : > { %vm603_vm2 = vcmp.eq.f32.partialorder %v1894_v44, inf  ;;  %vm605_vm3 = vcmp.eq.f32.partialorder %v1894_v44, 0.0  ;;  %v606_v28 = vand.u32 2147483648, %v1894_v44  ;;  %1494 = vrsqrt.f32 %v1970_v24 }
 0x178   : > { %vm631_vm4 = vcmp.eq.f32.partialorder %v1898_v47, inf  ;;  %vm633_vm5 = vcmp.eq.f32.partialorder %v1898_v47, 0.0  ;;  %v785_v29 = vsel %vm779_vm1, %v772_v15, %v773_v16  ;;  %1496 = vrsqrt.f32 %v1974_v17 }
 0x179   : > { %v634_v30 = vand.u32 2147483648, %v1898_v47  ;;  %v613_v32 = vand.u32 2147483648, %v1933_v1  ;;  %v776_v34 = vrot.slane %v1977_v22, 6  ;;  %v777_v36 = vrot.slane %v1980_v26, 6 }
 0x17a   : > { %vm610_vm6 = vcmp.eq.f32.partialorder %v1933_v1, inf  ;;  %v588_v38 = vsub.f32 1.0, %v580_v25  ;;  %v702_v39 = vsel %vm698_vm0, %v693_v27, %v694_v62  ;;  %v703_v40 = vsel %vm698_vm0, %v692_v60, %v693_v27 }
 0x17b   : > { %v584_v42 = vmul.f32 %v1985_v23, %v1985_v23  ;;  %vm612_vm7 = vcmp.eq.f32.partialorder %v1933_v1, 0.0  ;;  %vm638_vm8 = vcmp.eq.f32.partialorder %v1935_v2, inf  ;;  %v2013_v48 = vmul.f32 %v785_v29, %v1946_v7 }
 0x17c   : > { %v1487_v37 = vpop.eup %1486  ;;  %v781_v50 = vsel %vm779_vm1, %v776_v34, %v777_v36  ;;  %v2020_v51 = vmul.f32 %v1948_v9, %v703_v40  ;;  %vm640_vm10 = vcmp.eq.f32.partialorder %v1935_v2, 0.0  ;;  %v641_v18 = vand.u32 2147483648, %v1935_v2 }
 0x17d   : > { %v1489_v45 = vpop.eup %1488  ;;  %v602_v46 = vmul.f32 %v1487_v37, %v1894_v44  ;;  %v2026_v58 = vmax.f32 %v588_v38, 0.0  ;;  %v2029_v59 = vmul.f32 %v1884_v35, %v702_v39  ;;  %v2035_v61 = vmul.f32 %v781_v50, %v1980_v26 }
 0x17e   : > { %v630_v56 = vmul.f32 %v1489_v45, %v1898_v47  ;;  %v774_v20 = vrot.slane %v2020_v51, 6  ;;  %v592_v19 = vsub.f32 1.0, %v584_v42  ;;  %vm617_vm11 = vcmp.eq.f32.partialorder %v1970_v24, inf }
 0x17f   : > { %v604_v60 = vsel %vm603_vm2, %v1894_v44, %v602_v46  ;;  %v620_v3 = vand.u32 2147483648, %v1970_v24  ;;  %1498 = vrsqrt.f32 %v2026_v58  ;;  %vm619_vm12 = vcmp.eq.f32.partialorder %v1970_v24, 0.0 }
 0x180   : > { %v607_v62 = vsel %vm605_vm3, %v606_v28, %v604_v60  ;;  %v632_v0 = vsel %vm631_vm4, %v1898_v47, %v630_v56  ;;  %v854_v44 = vrot.slane %v2013_v48, 4  ;;  %vm645_vm13 = vcmp.eq.f32.partialorder %v1974_v17, inf  ;;  %v1491_v11 = vpop.eup %1490 }
 0x181   : > { %v2047_v4 = vmul.f32 %v1906_v52, %v607_v62  ;;  %v635_v8 = vsel %vm633_vm5, %v634_v30, %v632_v0  ;;  %v648_v21 = vand.u32 2147483648, %v1974_v17  ;;  %vm647_vm14 = vcmp.eq.f32.partialorder %v1974_v17, 0.0  ;;  %v1493_v28 = vpop.eup %1492 }
 0x182   : > { %v2056_v25 = vmul.f32 %v1914_v54, %v635_v8  ;;  %v775_v52 = vrot.slane %v2029_v59, 6  ;;  %v784_v47 = vsel %vm779_vm1, %v773_v16, %v774_v20  ;;  %v697_v27 = vrot.slane %v1985_v23, 7 }
 0x183   : > { %v609_v29 = vmul.f32 %v1491_v11, %v1933_v1  ;;  %v858_v30 = vrot.slane %v2035_v61, 4  ;;  %v2066_v37 = vmul.f32 %v784_v47, %v2020_v51  ;;  %v2068_v38 = vmax.f32 %v592_v19, 0.0 }
 0x184   : > { %v715_v54 = vrot.slane %v2047_v4, 7  ;;  %v637_v39 = vmul.f32 %v1493_v28, %v1935_v2  ;;  %v782_v40 = vsel %vm779_vm1, %v775_v52, %v776_v34  ;;  %v783_v16 = vsel %vm779_vm1, %v774_v20, %v775_v52  ;;  %v1495_v56 = vpop.eup %1494 }
 0x185   : > { %v611_v42 = vsel %vm610_vm6, %v1933_v1, %v609_v29  ;;  %v2080_v45 = vmul.f32 %v783_v16, %v2029_v59  ;;  %v2083_v46 = vmul.f32 %v782_v40, %v1977_v22  ;;  %v855_v50 = vrot.slane %v2066_v37, 4  ;;  %v1497_v19 = vpop.eup %1496 }
 0x186   : > { %v719_v60 = vrot.slane %v2056_v25, 7  ;;  %v614_v34 = vsel %vm612_vm7, %v613_v32, %v611_v42  ;;  %v639_v20 = vsel %vm638_vm8, %v1935_v2, %v637_v39  ;;  %1500 = vrsqrt.f32 %v2068_v38 }
 0x187   : > { %v666_v62 = vmul.f32 %v1917_v55, %v614_v34  ;;  %v642_v0 = vsel %vm640_vm10, %v641_v18, %v639_v20  ;;  %v616_v8 = vmul.f32 %v1495_v56, %v1970_v24  ;;  %vm624_vm15 = vcmp.eq.f32.partialorder %v2026_v58, inf }
 0x188   : > { %v856_v11 = vrot.slane %v2080_v45, 4  ;;  %v670_v1 = vmul.f32 %v1940_v5, %v642_v0  ;;  %v644_v32 = vmul.f32 %v1497_v19, %v1974_v17  ;;  %vm626_vm2 = vcmp.eq.f32.partialorder %v2026_v58, 0.0 }
 0x189   : > { %v857_v52 = vrot.slane %v2083_v46, 4  ;;  %v865_v55 = vsel %vm860_vm9, %v854_v44, %v855_v50  ;;  %v716_v2 = vrot.slane %v666_v62, 7  ;;  %v618_v18 = vsel %vm617_vm11, %v1970_v24, %v616_v8 }
 0x18a   : > { %v864_v47 = vsel %vm860_vm9, %v855_v50, %v856_v11  ;;  %v2113_v5 = vmul.f32 %v865_v55, %v2066_v37  ;;  %vm682_vm3 = vcmp.ge.s32.totalorder %v1872_v31, 1  ;;  %v720_v28 = vrot.slane %v670_v1, 7 }
 0x18b   : > { %v621_v29 = vsel %vm619_vm12, %v620_v3, %v618_v18  ;;  %v646_v39 = vsel %vm645_vm13, %v1974_v17, %v644_v32  ;;  %v862_v40 = vsel %vm860_vm9, %v857_v52, %v858_v30  ;;  %v729_v16 = vsel %vm698_vm0, %v715_v54, %v716_v2 }
 0x18c   : > { %v667_v42 = vmul.f32 %v1952_v10, %v621_v29  ;;  %v649_v24 = vsel %vm647_vm14, %v648_v21, %v646_v39  ;;  %v863_v3 = vsel %vm860_vm9, %v856_v11, %v857_v52  ;;  %v740_v50 = vmul.f32 %v1890_v41, %v729_v16  ;;  %v1499_v10 = vpop.eup %1498 }
 0x18d   : > { %v725_v56 = vsel %vm698_vm0, %v719_v60, %v720_v28  ;;  %v2140_v34 = vmul.f32 %v1962_v12, %v649_v24  ;;  %v2143_v20 = vmul.f32 %v864_v47, %v2080_v45  ;;  %v2147_v19 = vmul.f32 %v863_v3, %v2083_v46 }
 0x18e   : > { %v744_v17 = vmul.f32 %v1892_v43, %v725_v56  ;;  %v717_v21 = vrot.slane %v667_v42, 7  ;;  %v2150_v41 = vmul.f32 %v862_v40, %v2035_v61  ;;  %v2152_v0 = vadd.f32 %v740_v50, %v666_v62 }
 0x18f   : > { %v721_v8 = vrot.slane %v2140_v34, 7  ;;  %v623_v12 = vmul.f32 %v1499_v10, %v2026_v58  ;;  %v2158_v11 = vmul.f32 %v2143_v20, %v2113_v5  ;;  %v627_v52 = vand.u32 2147483648, %v2026_v58 }
 0x190   : > { %v2160_v32 = vadd.f32 %v744_v17, %v670_v1  ;;  %v728_v43 = vsel %vm698_vm0, %v716_v2, %v717_v21  ;;  %v2167_v55 = vmul.f32 %v2150_v41, %v2147_v19  ;;  %vm652_vm4 = vcmp.eq.f32.partialorder %v2068_v38, inf }
 0x191   : > { %v741_v62 = vmul.f32 %v1910_v53, %v728_v43  ;;  %v724_v18 = vsel %vm698_vm0, %v720_v28, %v721_v8  ;;  %v625_v1 = vsel %vm624_vm15, %v2026_v58, %v623_v12  ;;  %v797_v2 = vrot.slane %v2152_v0, 6 }
 0x192   : > { %v745_v47 = vmul.f32 %v1920_v57, %v724_v18  ;;  %v628_v29 = vsel %vm626_vm2, %v627_v52, %v625_v1  ;;  %v2184_v53 = vmul.f32 %v2147_v19, %v2143_v20  ;;  %vm763_vm5 = vcmp.ge.s32.totalorder %v1872_v31, 2 }
 0x193   : > { %v801_v28 = vrot.slane %v2160_v32, 6  ;;  %v749_v39 = vadd.f32 %v741_v62, %v667_v42  ;;  %v668_v40 = vmul.f32 %v1965_v13, %v628_v29  ;;  %v2191_v16 = vmul.f32 %v2167_v55, %v2158_v11  ;;  %v1501_v24 = vpop.eup %1500 }
 0x194   : > { %v2194_v3 = vadd.f32 %v745_v47, %v2140_v34  ;;  %vm654_vm6 = vcmp.eq.f32.partialorder %v2068_v38, 0.0  ;;  %v699_v58 = vsel %vm698_vm0, %v696_v63, %v697_v27  ;;  %v706_v13 = vsel %vm698_vm0, %v697_v27, %v690_v49 }
 0x195   : > { %v798_v42 = vrot.slane %v749_v39, 6  ;;  %v718_v50 = vrot.slane %v668_v40, 7  ;;  %v651_v56 = vmul.f32 %v1501_v24, %v2068_v38  ;;  %v707_v10 = vsel %vm682_vm3, %v706_v13, 1.0 }
 0x196   : > { %v802_v17 = vrot.slane %v2194_v3, 6  ;;  %v655_v57 = vand.u32 2147483648, %v2068_v38  ;;  %v2215_v63 = vmul.f32 %v1882_v33, %v707_v10  ;;  %v2218_v12 = vmul.f32 %v1985_v23, %v699_v58 }
 0x197   : > { %v809_v49 = vsel %vm779_vm1, %v797_v2, %v798_v42  ;;  %v726_v27 = vsel %vm698_vm0, %v718_v50, %v719_v60  ;;  %v727_v43 = vsel %vm698_vm0, %v717_v21, %v718_v50  ;;  %v653_v52 = vsel %vm652_vm4, %v2068_v38, %v651_v56 }
 0x198   : > { %v822_v62 = vmul.f32 %v809_v49, %v1946_v7  ;;  %v805_v18 = vsel %vm779_vm1, %v801_v28, %v802_v17  ;;  %v742_v1 = vmul.f32 %v1948_v9, %v727_v43  ;;  %v743_v47 = vmul.f32 %v1884_v35, %v726_v27 }
 0x199   : > { %v826_v60 = vmul.f32 %v805_v18, %v1980_v26  ;;  %v656_v21 = vsel %vm654_vm6, %v655_v57, %v653_v52  ;;  %v771_v29 = vrot.slane %v2215_v63, 6  ;;  %v778_v24 = vrot.slane %v2218_v12, 6 }
 0x19a   : > { %v2245_v58 = vadd.f32 %v822_v62, %v749_v39  ;;  %v750_v7 = vadd.f32 %v742_v1, %v668_v40  ;;  %v751_v13 = vadd.f32 %v743_v47, %v2056_v25  ;;  %v672_v50 = vmul.f32 %v1968_v14, %v656_v21 }
 0x19b   : > { %v2250_v9 = vadd.f32 %v826_v60, %v2194_v3  ;;  %v780_v35 = vsel %vm779_vm1, %v777_v36, %v778_v24  ;;  %v786_v38 = vsel %vm779_vm1, %v771_v29, %v772_v15  ;;  %v787_v39 = vsel %vm779_vm1, %v778_v24, %v771_v29 }
 0x19c   : > { %vm844_vm7 = vcmp.ge.s32.totalorder %v1872_v31, 4  ;;  %v879_v14 = vrot.slane %v2245_v58, 4  ;;  %v799_v25 = vrot.slane %v750_v7, 6  ;;  %v800_v40 = vrot.slane %v751_v13, 6 }
 0x19d   : > { %v722_v56 = vrot.slane %v672_v50, 7  ;;  %v883_v26 = vrot.slane %v2250_v9, 4  ;;  %v788_v36 = vsel %vm763_vm5, %v787_v39, 1.0  ;;  %v2268_v10 = vmul.f32 %v786_v38, %v1943_v6 }
 0x19e   : > { %v2271_v15 = vmul.f32 %v780_v35, %v2218_v12  ;;  %v806_v57 = vsel %vm779_vm1, %v800_v40, %v801_v28  ;;  %v807_v49 = vsel %vm779_vm1, %v799_v25, %v800_v40  ;;  %v808_v27 = vsel %vm779_vm1, %v798_v42, %v799_v25 }
 0x19f   : > { %v723_v43 = vsel %vm698_vm0, %v721_v8, %v722_v56  ;;  %v823_v52 = vmul.f32 %v808_v27, %v2020_v51  ;;  %v824_v62 = vmul.f32 %v807_v49, %v2029_v59  ;;  %v825_v18 = vmul.f32 %v806_v57, %v1977_v22 }
 0x1a0   : > { %v730_v28 = vsel %vm698_vm0, %v722_v56, %v715_v54  ;;  %v746_v42 = vmul.f32 %v1985_v23, %v723_v43  ;;  %v2294_v34 = vmul.f32 %v788_v36, %v2215_v63  ;;  %v853_v8 = vrot.slane %v2268_v10, 4 }
 0x1a1   : > { %v731_v1 = vsel %vm682_vm3, %v730_v28, 0.0  ;;  %v831_v51 = vadd.f32 %v823_v52, %v750_v7  ;;  %v832_v47 = vadd.f32 %v824_v62, %v751_v13  ;;  %v833_v59 = vadd.f32 %v825_v18, %v2160_v32 }
 0x1a2   : > { %v739_v22 = vmul.f32 %v1882_v33, %v731_v1  ;;  %v754_v60 = vadd.f32 %v746_v42, %v672_v50  ;;  %v852_v21 = vrot.slane %v2294_v34, 4  ;;  %v859_v54 = vrot.slane %v2271_v15, 4 }
 0x1a3   : > { %v866_v23 = vsel %vm860_vm9, %v853_v8, %v854_v44  ;;  %v880_v29 = vrot.slane %v831_v51, 4  ;;  %v881_v24 = vrot.slane %v832_v47, 4  ;;  %v882_v35 = vrot.slane %v833_v59, 4 }
 0x1a4   : > { %v747_v7 = vadd.f32 %v739_v22, %v2047_v4  ;;  %v803_v13 = vrot.slane %v754_v60, 6  ;;  %v861_v33 = vsel %vm860_vm9, %v858_v30, %v859_v54  ;;  %v867_v32 = vsel %vm860_vm9, %v852_v21, %v853_v8 }
 0x1a5   : > { %v868_v50 = vsel %vm860_vm9, %v859_v54, %v852_v21  ;;  %v887_v44 = vsel %vm860_vm9, %v881_v24, %v882_v35  ;;  %v888_v38 = vsel %vm860_vm9, %v880_v29, %v881_v24  ;;  %v889_v4 = vsel %vm860_vm9, %v879_v14, %v880_v29 }
 0x1a6   : > { %v796_v39 = vrot.slane %v747_v7, 6  ;;  %v904_v30 = vmul.f32 %v889_v4, %v2066_v37  ;;  %v905_v25 = vmul.f32 %v888_v38, %v2080_v45  ;;  %v804_v40 = vsel %vm779_vm1, %v802_v17, %v803_v13 }
 0x1a7   : > { %v869_v56 = vsel %vm844_vm7, %v868_v50, 1.0  ;;  %v827_v37 = vmul.f32 %v804_v40, %v2218_v12  ;;  %v886_v45 = vsel %vm860_vm9, %v882_v35, %v883_v26  ;;  %v906_v52 = vmul.f32 %v887_v44, %v2083_v46 }
 0x1a8   : > { %v810_v36 = vsel %vm779_vm1, %v796_v39, %v797_v2  ;;  %v811_v57 = vsel %vm779_vm1, %v803_v13, %v796_v39  ;;  %v912_v3 = vadd.f32 %v904_v30, %v831_v51  ;;  %v913_v17 = vadd.f32 %v905_v25, %v832_v47 }
 0x1a9   : > { %v812_v49 = vsel %vm763_vm5, %v811_v57, 0.0  ;;  %v821_v27 = vmul.f32 %v810_v36, %v1943_v6  ;;  %v835_v2 = vadd.f32 %v827_v37, %v754_v60  ;;  %v907_v62 = vmul.f32 %v886_v45, %v2035_v61 }
 0x1aa   : > { %v820_v43 = vmul.f32 %v812_v49, %v2215_v63  ;;  %v953_v12 = vmul.f32 %v2143_v20, %v912_v3  ;;  %v954_v18 = vmul.f32 %v2147_v19, %v913_v17  ;;  %v2351_v1 = vmul.f32 %v869_v56, %v2294_v34 }
 0x1ab   : > { %v829_v28 = vadd.f32 %v821_v27, %v2152_v0  ;;  %v884_v8 = vrot.slane %v835_v2, 4  ;;  %v914_v51 = vadd.f32 %v906_v52, %v833_v59  ;;  %v915_v6 = vadd.f32 %v907_v62, %v2250_v9 }
 0x1ac   : > { %v828_v42 = vadd.f32 %v820_v43, %v747_v7  ;;  %v961_v63 = vadd.f32 %v953_v12, %v913_v17  ;;  %v918_v46 = vmul.f32 %v867_v32, %v2268_v10  ;;  %v919_v61 = vmul.f32 %v866_v23, %v2013_v48 }
 0x1ad   : > { %v878_v47 = vrot.slane %v829_v28, 4  ;;  %v885_v20 = vsel %vm860_vm9, %v883_v26, %v884_v8  ;;  %v924_v19 = vmul.f32 %v861_v33, %v2271_v15  ;;  %v949_v0 = vmul.f32 0.0, %v2351_v1 }
 0x1ae   : > { %v877_v22 = vrot.slane %v828_v42, 4  ;;  %v1003_v59 = vmul.f32 %v2167_v55, %v961_v63  ;;  %v908_v21 = vmul.f32 %v885_v20, %v2271_v15  ;;  %v955_v54 = vmul.f32 %v2150_v41, %v914_v51 }
 0x1af   : > { %v890_v60 = vsel %vm860_vm9, %v878_v47, %v879_v14  ;;  %v956_v29 = vmul.f32 %v924_v19, %v915_v6  ;;  %v962_v14 = vadd.f32 %v954_v18, %v914_v51  ;;  %v966_v33 = vmul.f32 %v918_v46, %v2351_v1 }
 0x1b0   : > { %v891_v9 = vsel %vm860_vm9, %v877_v22, %v878_v47  ;;  %v892_v26 = vsel %vm860_vm9, %v884_v8, %v877_v22  ;;  %v903_v23 = vmul.f32 %v890_v60, %v2013_v48  ;;  %v916_v35 = vadd.f32 %v908_v21, %v835_v2 }
 0x1b1   : > { %v893_v55 = vsel %vm844_vm7, %v892_v26, 0.0  ;;  %v902_v24 = vmul.f32 %v891_v9, %v2268_v10  ;;  %v963_v13 = vadd.f32 %v955_v54, %v915_v6  ;;  %v967_v44 = vmul.f32 %v919_v61, %v918_v46 }
 0x1b2   : > { %v901_v15 = vmul.f32 %v893_v55, %v2294_v34  ;;  %v911_v7 = vadd.f32 %v903_v23, %v2245_v58  ;;  %v964_v50 = vadd.f32 %v956_v29, %v916_v35  ;;  %v968_v48 = vmul.f32 %v2113_v5, %v919_v61 }
 0x1b3   : > { %v910_v32 = vadd.f32 %v902_v24, %v829_v28  ;;  %v972_v4 = vmul.f32 %v924_v19, %v2150_v41  ;;  %v998_v10 = vmul.f32 0.0, %v966_v33  ;;  %v1011_v30 = vadd.f32 %v1003_v59, %v963_v13  ;;  %v1264_v59 = vld [vmem:[#allocation2] ss:$0 sm:$0xff] }
 0x1b4   : > { %v909_v38 = vadd.f32 %v901_v15, %v828_v42  ;;  %v952_v31 = vmul.f32 %v2113_v5, %v911_v7  ;;  %v1015_v34 = vmul.f32 %v967_v44, %v2351_v1  ;;  %v1016_v25 = vmul.f32 %v968_v48, %v966_v33 }
 0x1b5   : > { %v951_v39 = vmul.f32 %v919_v61, %v910_v32  ;;  %v1004_v36 = vmul.f32 %v972_v4, %v962_v14  ;;  %v1017_v37 = vmul.f32 %v2158_v11, %v967_v44  ;;  %v1018_v45 = vmul.f32 %v2184_v53, %v968_v48 }
 0x1b6   : > { %v950_v58 = vmul.f32 %v918_v46, %v909_v38  ;;  %v957_v40 = vadd.f32 %v949_v0, %v909_v38  ;;  %v960_v56 = vadd.f32 %v952_v31, %v912_v3  ;;  %v1020_v17 = vmul.f32 %v972_v4, %v2184_v53 }
 0x1b7   : > { %v959_v57 = vadd.f32 %v951_v39, %v911_v7  ;;  %v1012_v2 = vadd.f32 %v1004_v36, %v964_v50  ;;  %v1047_v52 = vmul.f32 0.0, %v1015_v34  ;;  %v1048_v3 = vmul.f32 0.0, %v1016_v25 }
 0x1b8   : > { %v958_v5 = vadd.f32 %v950_v58, %v910_v32  ;;  %v999_v41 = vmul.f32 %v967_v44, %v957_v40  ;;  %v1002_v49 = vmul.f32 %v2184_v53, %v960_v56  ;;  %v1005_v27 = vadd.f32 %v957_v40, %v949_v0 }
 0x1b9   : > { %v1001_v43 = vmul.f32 %v2158_v11, %v959_v57  ;;  %v1065_v6 = vmul.f32 %v1017_v37, %v2351_v1  ;;  %v1066_v20 = vmul.f32 %v1018_v45, %v966_v33  ;;  %v1067_v19 = vmul.f32 %v2191_v16, %v1015_v34 }
 0x1ba   : > { %v1000_v62 = vmul.f32 %v968_v48, %v958_v5  ;;  %v1006_v12 = vadd.f32 %v998_v10, %v958_v5  ;;  %v1007_v18 = vadd.f32 %v999_v41, %v959_v57  ;;  %v1010_v28 = vadd.f32 %v1002_v49, %v962_v14 }
 0x1bb   : > { %v1009_v42 = vadd.f32 %v1001_v43, %v961_v63  ;;  %v1049_v8 = vmul.f32 %v1017_v37, %v1005_v27  ;;  %v1053_v51 = vadd.f32 %v1005_v27, %v949_v0  ;;  %v1068_v54 = vmul.f32 %v1020_v17, %v1016_v25 }
 0x1bc   : > { %v1008_v47 = vadd.f32 %v1000_v62, %v960_v56  ;;  %v1050_v46 = vmul.f32 %v1018_v45, %v1006_v12  ;;  %v1051_v53 = vmul.f32 %v2191_v16, %v1007_v18  ;;  %v1054_v61 = vadd.f32 %v1006_v12, %v998_v10 }
 0x1bd   : > { %v1055_v11 = vadd.f32 %v1047_v52, %v1007_v18  ;;  %v1057_v22 = vadd.f32 %v1049_v8, %v1009_v42  ;;  %v1079_v9 = vmul.f32 %v1264_v59, %v1016_v25  ;;  %v1081_v26 = vmul.f32 %v1264_v59, %v1066_v20 }
 0x1be   : > { %v1052_v60 = vmul.f32 %v1020_v17, %v1008_v47  ;;  %v1056_v63 = vadd.f32 %v1048_v3, %v1008_v47  ;;  %v1058_v21 = vadd.f32 %v1050_v46, %v1010_v28  ;;  %v1059_v0 = vadd.f32 %v1051_v53, %v1011_v30 }
 0x1bf   : > { %v1082_v23 = vmul.f32 %v1264_v59, %v1067_v19  ;;  %v1076_v55 = vmul.f32 %v1264_v59, %v2351_v1  ;;  %v1077_v24 = vmul.f32 %v1264_v59, %v966_v33  ;;  %v1078_v16 = vmul.f32 %v1264_v59, %v1015_v34 }
 0x1c0   : > { %v1060_v29 = vadd.f32 %v1052_v60, %v1012_v2  ;;  %v1083_v35 = vmul.f32 %v1264_v59, %v1068_v54  ;;  %v1087_v14 = vadd.f32 %v1079_v9, %v1056_v63  ;;  %v1089_v15 = vadd.f32 %v1081_v26, %v1058_v21 }
 0x1c1   : > { %v1090_v7 = vadd.f32 %v1082_v23, %v1059_v0  ;;  %v1080_v13 = vmul.f32 %v1264_v59, %v1065_v6  ;;  %v1084_v32 = vadd.f32 %v1076_v55, %v1053_v51  ;;  %v1085_v50 = vadd.f32 %v1077_v24, %v1054_v61 }
 0x1c2   : > { %v1086_v44 = vadd.f32 %v1078_v16, %v1055_v11  ;;  %v1091_v1 = vadd.f32 %v1083_v35, %v1060_v29  ;;  %1095 = vst [vmem:[%s1837_s15 + $0x18] sm:$0xff] %v1087_v14  ;;  %1097 = vst [vmem:[%s1837_s15 + $0x28] sm:$0xff] %v1089_v15 }
 0x1c3   : > { %1098 = vst [vmem:[%s1837_s15 + $0x30] sm:$0xff] %v1090_v7  ;;  %v1088_v33 = vadd.f32 %v1080_v13, %v1057_v22  ;;  %1092 = vst [vmem:[%s1837_s15] sm:$0xff] %v1084_v32 }
 0x1c4   : > { %1093 = vst [vmem:[%s1837_s15 + $0x8] sm:$0xff] %v1085_v50  ;;  %1094 = vst [vmem:[%s1837_s15 + $0x10] sm:$0xff] %v1086_v44 }
 0x1c5   : > { %1099 = vst [vmem:[%s1837_s15 + $0x38] sm:$0xff] %v1091_v1  ;;  %1100 = vst [vmem:[#allocation2 - $0x7] sm:$0x80] %v1091_v1 }
 0x1c6   : > { %1096 = vst [vmem:[%s1837_s15 + $0x20] sm:$0xff] %v1088_v33 }
 0x1c7   : > { %1569 = shalt.err (!%p1566_p4)
}
 0x1c8   : > { %s1570_s9 = scalar_lea.hbm %s2410_s11, 1024  ;;  %s1574_s27 = scalar_lea.hbm %s2496_s13, 4096 }
 0x1c9   : > { %p1571_p6 = scmp.ne.s32.totalorder %s2410_s11, %s1570_s9  ;;  %p1575_p10 = scmp.lt.s32.totalorder %s2410_s11, %s2496_s13 }
 0x1ca   : > { %p1576_p12 = scmp.lt.s32.totalorder %s1574_s27, %s1570_s9 }
 0x1cb   : > { %p1572_p7 = pnand %p1571_p6, %p1783_p11 }
 0x1cc   : > { %p1577_p8 = por %p1576_p12, %p1575_p10 }
 0x1cd   : > { %p1573_p9 = pneg %p1572_p7 }
 0x1cf   : > { %p1578_p1 = pnand %p1577_p8, %p1573_p9 }
 0x1d1   : > { %1581 = shalt.err (!%p1578_p1)
}
 0x1d2   : > { %s1665_s10 = smov 128   ;;  %s1666_s26 = smov 8  }
 0x1d3   : > { %1293 = dma.vmem_to_hbm [thread:$0]  (%p1783_p11), %s2402_s18, 1024, %s2410_s11, %s1102_s24, %s1665_s10, %s1665_s10, %s1666_s26  }
 0x1d4 PF: > { %s2497_s14 = sld [smem:[#allocation12_spill]]  ;;  %p1310_p13 = scmp.ge.s32.totalorder %s1656_s22, 2 }
 0x1d5   : > { %s2498_s19 = sld [smem:[#allocation14_spill]] }
 0x1da   : > { %s1132_s6 = sand.u32 1, %s2497_s14  }
 0x1db   : > { %p2499_p2 = scmp.ne.s32.totalorder %s2498_s19, 0  ;;  %s1133_s7 = scalar_lea.sflag [#allocation5], %s1132_s6 }
 0x1dd   : > { %p1304_p0 = pnand %p1310_p13, %p2499_p2 }
 0x1df   : > { %p1305_p3 = pneg %p1304_p0 }
 0x1e1   : > { %1623 = dma.done.wait (%p1305_p3), %s1133_s7, 1024  }
 0x1e2   : > { %1625 = vsyncadd (%p1305_p3), %s1133_s7, 4294966272  ;;  %s21_s22 = sadd.s32 1, %s1656_s22   ;;  %s2500_s18 = sld [smem:[#allocation13_spill]] }
 0x1e3   : > { %p18_p5 = scmp.ge.s32.totalorder %s21_s22, 6   ;;  %s2501_s20 = sld [smem:[#allocation15_spill]] }
 0x1e4   : > { %s2502_s15 = smov %s1632_s16  ;;  %s2503_s16 = smov %s1636_s17 }
 0x1e5   : > { %s2504_s17 = smov %s1800_s1  ;;  %s2505_s19 = smov %s1652_s21 }
 0x1e6   : > { %s2506_s21 = smov %s2512_s12  ;;  %20 = sbr.rel (!%p18_p5) target bundleno = 11 (0xb), region = 89 }
 0x1eb   :  { %1138 = vsyncpa [#allocation4], 1 }
 0x1ec   :  { %1140 = vsyncpa [#allocation4 + $0x1], 1 }
 0x1ed   :  { %1141 = vsyncpa [#allocation7], 1 }
 0x1ee   :  { %1142 = vsyncpa [#allocation5], 1 }
 0x1ef   :  { %1144 = vsyncpa [#allocation5 + $0x1], 1 }

</bundles_post_ra>
